<compile_context>
chip_gen: v7x
topology: tpu7x:2x2x1
jax: 0.10.0
libtpu: 0.0.40
codegen_flags: <defaults>
</compile_context>

<pallas_src>
import functools

import jax
import jax.numpy as jnp
from jax.experimental import pallas as pl
from jax.experimental.pallas import tpu as pltpu

LN_EPS = 1e-5
LANE = 128
SUBLANE = 8


def _round_up(n, m):
    return ((n + m - 1) // m) * m


def _pad_axis(x, axis, new_size):
    pad = new_size - x.shape[axis]
    if pad == 0:
        return x
    widths = [(0, 0)] * x.ndim
    widths[axis] = (0, pad)
    return jnp.pad(x, widths)


# ----------------------------------------------------------------------------
# Kernel
# ----------------------------------------------------------------------------
def mergenet_kernel(true_widths, padded_widths, compute_dtype, *refs):
    """One batch tile of the full MergeNet forward.

    refs layout:
      x_ref (TB, Din_p), w_in_ref (Din_p, F0_p) [bf16], b_in_ref (1, F0_p),
      [gamma_i, beta_i, w_i (bf16), b_i] * n_layer,
      out_ref (TB, Fout_p)
    """
    n_layer = len(true_widths)
    x_ref, w_in_ref, b_in_ref = refs[0], refs[1], refs[2]
    layer_refs = refs[3:3 + 4 * n_layer]
    out_ref = refs[-1]

    # Fused left/right projection: inputs were pre-concatenated in the wrapper
    # and the weight is block-diagonal, so one MXU matmul yields (TB, 2*hidden).
    x = jnp.dot(x_ref[...].astype(compute_dtype), w_in_ref[...],
                preferred_element_type=jnp.float32) + b_in_ref[...]

    # merge_block: repeat [LayerNorm -> ReLU -> Linear]; no ReLU on Linear outputs.
    for i in range(n_layer):
        g_ref, be_ref, w_ref, b_ref = layer_refs[4 * i: 4 * i + 4]
        f_true = true_widths[i]
        f_pad = padded_widths[i]

        # LayerNorm over the *true* feature width (torch semantics: biased
        # variance, eps=1e-5).  Padded lanes of x are exactly zero (weights,
        # biases, gamma, beta are all zero-padded), so lane sums over the
        # padded width equal the true sums; only the (x - mean) contribution
        # of the padded lanes needs a static correction in the variance.
        s = jnp.sum(x, axis=-1, keepdims=True)
        mean = s * (1.0 / f_true)
        d = x - mean
        ssq = jnp.sum(d * d, axis=-1, keepdims=True)
        var = (ssq - float(f_pad - f_true) * mean * mean) * (1.0 / f_true)
        xn = d * jax.lax.rsqrt(var + LN_EPS)
        x = xn * g_ref[...] + be_ref[...]          # padded lanes -> exactly 0
        x = jnp.maximum(x, 0.0)                    # relu(LayerNorm(x))
        x = jnp.dot(x.astype(compute_dtype), w_ref[...],
                    preferred_element_type=jnp.float32) + b_ref[...]

    out_ref[...] = x.astype(out_ref.dtype)


# ----------------------------------------------------------------------------
# Parameters (true, un-padded shapes, matching MergeNet.__init__)
# ----------------------------------------------------------------------------
def make_mergenet_params(key, left_emb_size, right_emb_size, hidden_size,
                         n_layer, class_num, use_bias=True):
    keys = jax.random.split(key, 2 + n_layer)

    def linear(k, fan_in, fan_out):
        kw, kb = jax.random.split(k)
        w = 0.05 * jax.random.normal(kw, (fan_in, fan_out), jnp.float32)
        b = 0.02 * jax.random.normal(kb, (1, fan_out), jnp.float32)
        return w, b

    params = dict(left_emb_size=left_emb_size, right_emb_size=right_emb_size,
                  hidden_size=hidden_size, n_layer=n_layer, class_num=class_num)
    params["w_left"], params["b_left"] = linear(keys[0], left_emb_size, hidden_size)
    params["w_right"], params["b_right"] = linear(keys[1], right_emb_size, hidden_size)

    blocks = []
    input_size = 2 * hidden_size
    for idx in range(n_layer):
        output_size = class_num if idx + 1 == n_layer else input_size // 2
        kg, kb2, kw = jax.random.split(keys[2 + idx], 3)
        gamma = 1.0 + 0.1 * jax.random.normal(kg, (1, input_size), jnp.float32)
        beta = 0.05 * jax.random.normal(kb2, (1, input_size), jnp.float32)
        w, b = linear(kw, input_size, output_size)
        if not use_bias:
            b = jnp.zeros((1, output_size), jnp.float32)
        blocks.append((gamma, beta, w, b))
        input_size = output_size
    params["blocks"] = blocks
    return params


# ----------------------------------------------------------------------------
# Wrapper-side padding / fusion (one-time layout plumbing, plain XLA)
# ----------------------------------------------------------------------------
def prepare_padded_params(params, compute_dtype=jnp.bfloat16):
    L = params["left_emb_size"]
    R = params["right_emb_size"]
    H = params["hidden_size"]

    d_in = L + R
    d_in_p = _round_up(d_in, LANE)
    f0 = 2 * H
    f0_p = _round_up(f0, LANE)

    # Block-diagonal fused input projection (kills the in-kernel lane concat).
    w_in = jnp.zeros((d_in, f0), jnp.float32)
    w_in = w_in.at[:L, :H].set(params["w_left"])
    w_in = w_in.at[L:, H:].set(params["w_right"])
    b_in = jnp.concatenate([params["b_left"], params["b_right"]], axis=-1)

    w_in_p = _pad_axis(_pad_axis(w_in, 0, d_in_p), 1, f0_p).astype(compute_dtype)
    b_in_p = _pad_axis(b_in, 1, f0_p)

    blocks_p = []
    true_widths, padded_widths = [], []
    f = f0
    for (gamma, beta, w, b) in params["blocks"]:
        f_p = _round_up(f, LANE)
        f_out = w.shape[1]
        f_out_p = _round_up(f_out, LANE)
        gamma_p = _pad_axis(gamma, 1, f_p)   # zero pad -> padded lanes stay 0
        beta_p = _pad_axis(beta, 1, f_p)
        w_p = _pad_axis(_pad_axis(w, 0, f_p), 1, f_out_p).astype(compute_dtype)
        b_p = _pad_axis(b, 1, f_out_p)
        blocks_p.append((gamma_p, beta_p, w_p, b_p))
        true_widths.append(f)
        padded_widths.append(f_p)
        f = f_out

    return dict(d_in=d_in, d_in_p=d_in_p, w_in=w_in_p, b_in=b_in_p,
                blocks=blocks_p,
                true_widths=tuple(true_widths),
                padded_widths=tuple(padded_widths),
                out_true=f, out_pad=_round_up(f, LANE),
                compute_dtype=compute_dtype)


# ----------------------------------------------------------------------------
# Forward
# ----------------------------------------------------------------------------
def mergenet_forward(padded, left_embedding, right_embedding, *, batch_tile=256):
    batch = left_embedding.shape[0]
    d_in_p = padded["d_in_p"]
    out_pad = padded["out_pad"]
    n_layer = len(padded["blocks"])

    # Lane-concatenate + pad the inputs in the wrapper (no in-kernel concat).
    x = jnp.concatenate([left_embedding, right_embedding], axis=-1)
    x = _pad_axis(x, 1, d_in_p)

    tb = min(batch_tile, _round_up(batch, SUBLANE))
    b_pad = _round_up(batch, tb)
    x = _pad_axis(x, 0, b_pad)

    flat_args = [x, padded["w_in"], padded["b_in"]]
    for (g, be, w, b) in padded["blocks"]:
        flat_args.extend([g, be, w, b])

    # Parameters: full-extent, grid-invariant blocks (resident in VMEM).
    def whole(a):
        return pl.BlockSpec(a.shape, lambda i: (0, 0))

    in_specs = [pl.BlockSpec((tb, d_in_p), lambda i: (i, 0))]
    in_specs += [whole(a) for a in flat_args[1:]]
    out_specs = pl.BlockSpec((tb, out_pad), lambda i: (i, 0))

    # VMEM budget: (possibly double-buffered) params + double-buffered in/out
    # tiles + f32 working set.  Clamp to [32 MiB, 64 MiB] so it is valid on
    # v5e/v6e (128 MiB physical) and v7x (64 MiB physical).
    param_bytes = sum(int(a.size) * a.dtype.itemsize for a in flat_args[1:])
    tile_bytes = 2 * tb * d_in_p * 4 + 2 * tb * out_pad * 4
    widest = max(padded["padded_widths"] + (d_in_p, out_pad))
    work_bytes = 4 * tb * widest * 4
    vmem_bytes = int(max(32 * 2**20,
                         min(64 * 2**20,
                             2 * param_bytes + tile_bytes + work_bytes + 4 * 2**20)))

    # Advisory cost estimate so XLA schedules around the custom call.
    dims = [(d_in_p, padded["padded_widths"][0])]
    for i in range(n_layer):
        k = padded["padded_widths"][i]
        n = padded["padded_widths"][i + 1] if i + 1 < n_layer else out_pad
        dims.append((k, n))
    flops = int(2 * b_pad * sum(k * n for k, n in dims))
    bytes_accessed = int(b_pad * d_in_p * 4 + b_pad * out_pad * 4 + param_bytes)
    cost = pl.CostEstimate(flops=flops,
                           transcendentals=int(b_pad * n_layer),
                           bytes_accessed=bytes_accessed)

    kernel = functools.partial(mergenet_kernel, padded["true_widths"],
                               padded["padded_widths"], padded["compute_dtype"])

    out = pl.pallas_call(
        kernel,
        out_shape=jax.ShapeDtypeStruct((b_pad, out_pad), jnp.float32),
        grid=(b_pad // tb,),
        in_specs=in_specs,
        out_specs=out_specs,
        compiler_params=pltpu.CompilerParams(
            dimension_semantics=("parallel",),
            vmem_limit_bytes=vmem_bytes),
        cost_estimate=cost,
    )(*flat_args)

    return out[:batch, :padded["out_true"]]


# ----------------------------------------------------------------------------
# Pure-JAX reference mirroring the PyTorch forward (for validation)
# ----------------------------------------------------------------------------
def mergenet_reference(params, left_embedding, right_embedding,
                       compute_dtype=jnp.float32):
    def dot(a, w):
        return jnp.dot(a.astype(compute_dtype), w.astype(compute_dtype),
                       preferred_element_type=jnp.float32)

    left = dot(left_embedding, params["w_left"]) + params["b_left"]
    right = dot(right_embedding, params["w_right"]) + params["b_right"]
    x = jnp.concatenate([left, right], axis=-1)
    for (gamma, beta, w, b) in params["blocks"]:
        mean = jnp.mean(x, axis=-1, keepdims=True)
        var = jnp.mean((x - mean) ** 2, axis=-1, keepdims=True)
        x = (x - mean) * jax.lax.rsqrt(var + LN_EPS) * gamma + beta
        x = jnp.maximum(x, 0.0)
        x = dot(x, w) + b
    return x


if __name__ == "__main__":
    # Small, forward-consistent shapes.
    batch = 2
    left_emb_size = 16
    right_emb_size = 24
    hidden_size = 32
    n_layer = 3
    class_num = 5

    key = jax.random.PRNGKey(0)
    k_params, k_left, k_right = jax.random.split(key, 3)

    params = make_mergenet_params(k_params, left_emb_size, right_emb_size,
                                  hidden_size, n_layer, class_num, use_bias=True)
    left_embedding = jax.random.normal(k_left, (batch, left_emb_size), jnp.float32)
    right_embedding = jax.random.normal(k_right, (batch, right_emb_size), jnp.float32)

    padded = prepare_padded_params(params, compute_dtype=jnp.bfloat16)
    out = mergenet_forward(padded, left_embedding, right_embedding)
    out = jax.block_until_ready(out)
    assert out.shape == (batch, class_num), out.shape

    # Reference with matched matmul dtype (bf16-in / f32-accumulate) -> tight check.
    ref_bf16 = mergenet_reference(params, left_embedding, right_embedding,
                                  compute_dtype=jnp.bfloat16)
    assert jnp.allclose(out, ref_bf16, atol=1e-2, rtol=1e-2), (out, ref_bf16)

    # Pure-f32 reference -> loose check bounding the bf16 matmul error.
    ref_f32 = mergenet_reference(params, left_embedding, right_embedding,
                                 compute_dtype=jnp.float32)
    assert jnp.allclose(out, ref_f32, atol=5e-2, rtol=5e-2), (out, ref_f32)

    print("KERNEL_OK")
</pallas_src>

<mosaic_0001>
module attributes {stable_mosaic.version = 11 : i64} {
  func.func @mergenet_kernel(%arg0: i32, %arg1: memref<8x128xf32, #tpu.memory_space<vmem>>, %arg2: memref<128x128xbf16, #tpu.memory_space<vmem>>, %arg3: memref<1x128xf32, #tpu.memory_space<vmem>>, %arg4: memref<1x128xf32, #tpu.memory_space<vmem>>, %arg5: memref<1x128xf32, #tpu.memory_space<vmem>>, %arg6: memref<128x128xbf16, #tpu.memory_space<vmem>>, %arg7: memref<1x128xf32, #tpu.memory_space<vmem>>, %arg8: memref<1x128xf32, #tpu.memory_space<vmem>>, %arg9: memref<1x128xf32, #tpu.memory_space<vmem>>, %arg10: memref<128x128xbf16, #tpu.memory_space<vmem>>, %arg11: memref<1x128xf32, #tpu.memory_space<vmem>>, %arg12: memref<1x128xf32, #tpu.memory_space<vmem>>, %arg13: memref<1x128xf32, #tpu.memory_space<vmem>>, %arg14: memref<128x128xbf16, #tpu.memory_space<vmem>>, %arg15: memref<1x128xf32, #tpu.memory_space<vmem>>, %arg16: memref<8x128xf32, #tpu.memory_space<vmem>>) attributes {dimension_semantics = [#tpu.dimension_semantics<parallel>], iteration_bounds = array<i64: 1>, scalar_prefetch = 0 : i64, scratch_operands = 0 : i64, tpu.core_type = #tpu.core_type<tc>, window_params = [{transform_indices = @transform_0, window_bounds = array<i64: 8, 128>}, {pipeline_mode = #tpu.pipeline_mode<synchronous>, transform_indices = @transform_1, window_bounds = array<i64: 128, 128>}, {pipeline_mode = #tpu.pipeline_mode<synchronous>, transform_indices = @transform_2, window_bounds = array<i64: 1, 128>}, {pipeline_mode = #tpu.pipeline_mode<synchronous>, transform_indices = @transform_3, window_bounds = array<i64: 1, 128>}, {pipeline_mode = #tpu.pipeline_mode<synchronous>, transform_indices = @transform_4, window_bounds = array<i64: 1, 128>}, {pipeline_mode = #tpu.pipeline_mode<synchronous>, transform_indices = @transform_5, window_bounds = array<i64: 128, 128>}, {pipeline_mode = #tpu.pipeline_mode<synchronous>, transform_indices = @transform_6, window_bounds = array<i64: 1, 128>}, {pipeline_mode = #tpu.pipeline_mode<synchronous>, transform_indices = @transform_7, window_bounds = array<i64: 1, 128>}, {pipeline_mode = #tpu.pipeline_mode<synchronous>, transform_indices = @transform_8, window_bounds = array<i64: 1, 128>}, {pipeline_mode = #tpu.pipeline_mode<synchronous>, transform_indices = @transform_9, window_bounds = array<i64: 128, 128>}, {pipeline_mode = #tpu.pipeline_mode<synchronous>, transform_indices = @transform_10, window_bounds = array<i64: 1, 128>}, {pipeline_mode = #tpu.pipeline_mode<synchronous>, transform_indices = @transform_11, window_bounds = array<i64: 1, 128>}, {pipeline_mode = #tpu.pipeline_mode<synchronous>, transform_indices = @transform_12, window_bounds = array<i64: 1, 128>}, {pipeline_mode = #tpu.pipeline_mode<synchronous>, transform_indices = @transform_13, window_bounds = array<i64: 128, 128>}, {pipeline_mode = #tpu.pipeline_mode<synchronous>, transform_indices = @transform_14, window_bounds = array<i64: 1, 128>}, {transform_indices = @transform_15, window_bounds = array<i64: 8, 128>}]} {
    %c0 = arith.constant 0 : index
    %c0_0 = arith.constant 0 : index
    %0 = vector.load %arg1[%c0, %c0_0] : memref<8x128xf32, #tpu.memory_space<vmem>>, vector<8x128xf32>
    %1 = arith.truncf %0 : vector<8x128xf32> to vector<8x128xbf16>
    %c0_1 = arith.constant 0 : index
    %c0_2 = arith.constant 0 : index
    %2 = vector.load %arg2[%c0_1, %c0_2] : memref<128x128xbf16, #tpu.memory_space<vmem>>, vector<128x128xbf16>
    %cst = arith.constant dense<0.000000e+00> : vector<8x128xf32>
    %3 = tpu.matmul %1, %2, %cst {dimension_numbers = #tpu.dot_dimension_numbers<[1], [0], [0], [1], [0, 0, 1, 1], [], []>} : vector<8x128xbf16>, vector<128x128xbf16>, vector<8x128xf32> -> vector<8x128xf32>
    %c0_3 = arith.constant 0 : index
    %c0_4 = arith.constant 0 : index
    %4 = vector.load %arg3[%c0_3, %c0_4] : memref<1x128xf32, #tpu.memory_space<vmem>>, vector<1x128xf32>
    %5 = vector.broadcast %4 : vector<1x128xf32> to vector<8x128xf32>
    %6 = arith.addf %3, %5 : vector<8x128xf32>
    %cst_5 = arith.constant dense<0.000000e+00> : vector<8xf32>
    %7 = vector.multi_reduction <add>, %6, %cst_5 [1] : vector<8x128xf32> to vector<8xf32>
    %8 = vector.shape_cast %7 : vector<8xf32> to vector<8x1xf32>
    %cst_6 = arith.constant 1.562500e-02 : f32
    %9 = vector.broadcast %cst_6 : f32 to vector<8x1xf32>
    %10 = arith.mulf %8, %9 : vector<8x1xf32>
    %11 = vector.broadcast %10 : vector<8x1xf32> to vector<8x128xf32>
    %12 = arith.subf %6, %11 : vector<8x128xf32>
    %13 = arith.mulf %12, %12 : vector<8x128xf32>
    %cst_7 = arith.constant dense<0.000000e+00> : vector<8xf32>
    %14 = vector.multi_reduction <add>, %13, %cst_7 [1] : vector<8x128xf32> to vector<8xf32>
    %15 = vector.shape_cast %14 : vector<8xf32> to vector<8x1xf32>
    %cst_8 = arith.constant 6.400000e+01 : f32
    %16 = vector.broadcast %cst_8 : f32 to vector<8x1xf32>
    %17 = arith.mulf %16, %10 : vector<8x1xf32>
    %18 = arith.mulf %17, %10 : vector<8x1xf32>
    %19 = arith.subf %15, %18 : vector<8x1xf32>
    %cst_9 = arith.constant 1.562500e-02 : f32
    %20 = vector.broadcast %cst_9 : f32 to vector<8x1xf32>
    %21 = arith.mulf %19, %20 : vector<8x1xf32>
    %cst_10 = arith.constant 9.99999974E-6 : f32
    %22 = vector.broadcast %cst_10 : f32 to vector<8x1xf32>
    %23 = arith.addf %21, %22 : vector<8x1xf32>
    %24 = math.rsqrt %23 : vector<8x1xf32>
    %25 = vector.broadcast %24 : vector<8x1xf32> to vector<8x128xf32>
    %26 = arith.mulf %12, %25 : vector<8x128xf32>
    %c0_11 = arith.constant 0 : index
    %c0_12 = arith.constant 0 : index
    %27 = vector.load %arg4[%c0_11, %c0_12] : memref<1x128xf32, #tpu.memory_space<vmem>>, vector<1x128xf32>
    %28 = vector.broadcast %27 : vector<1x128xf32> to vector<8x128xf32>
    %29 = arith.mulf %26, %28 : vector<8x128xf32>
    %c0_13 = arith.constant 0 : index
    %c0_14 = arith.constant 0 : index
    %30 = vector.load %arg5[%c0_13, %c0_14] : memref<1x128xf32, #tpu.memory_space<vmem>>, vector<1x128xf32>
    %31 = vector.broadcast %30 : vector<1x128xf32> to vector<8x128xf32>
    %32 = arith.addf %29, %31 : vector<8x128xf32>
    %cst_15 = arith.constant 0.000000e+00 : f32
    %33 = vector.broadcast %cst_15 : f32 to vector<8x128xf32>
    %34 = arith.maximumf %32, %33 : vector<8x128xf32>
    %35 = arith.truncf %34 : vector<8x128xf32> to vector<8x128xbf16>
    %c0_16 = arith.constant 0 : index
    %c0_17 = arith.constant 0 : index
    %36 = vector.load %arg6[%c0_16, %c0_17] : memref<128x128xbf16, #tpu.memory_space<vmem>>, vector<128x128xbf16>
    %cst_18 = arith.constant dense<0.000000e+00> : vector<8x128xf32>
    %37 = tpu.matmul %35, %36, %cst_18 {dimension_numbers = #tpu.dot_dimension_numbers<[1], [0], [0], [1], [0, 0, 1, 1], [], []>} : vector<8x128xbf16>, vector<128x128xbf16>, vector<8x128xf32> -> vector<8x128xf32>
    %c0_19 = arith.constant 0 : index
    %c0_20 = arith.constant 0 : index
    %38 = vector.load %arg7[%c0_19, %c0_20] : memref<1x128xf32, #tpu.memory_space<vmem>>, vector<1x128xf32>
    %39 = vector.broadcast %38 : vector<1x128xf32> to vector<8x128xf32>
    %40 = arith.addf %37, %39 : vector<8x128xf32>
    %cst_21 = arith.constant dense<0.000000e+00> : vector<8xf32>
    %41 = vector.multi_reduction <add>, %40, %cst_21 [1] : vector<8x128xf32> to vector<8xf32>
    %42 = vector.shape_cast %41 : vector<8xf32> to vector<8x1xf32>
    %cst_22 = arith.constant 3.125000e-02 : f32
    %43 = vector.broadcast %cst_22 : f32 to vector<8x1xf32>
    %44 = arith.mulf %42, %43 : vector<8x1xf32>
    %45 = vector.broadcast %44 : vector<8x1xf32> to vector<8x128xf32>
    %46 = arith.subf %40, %45 : vector<8x128xf32>
    %47 = arith.mulf %46, %46 : vector<8x128xf32>
    %cst_23 = arith.constant dense<0.000000e+00> : vector<8xf32>
    %48 = vector.multi_reduction <add>, %47, %cst_23 [1] : vector<8x128xf32> to vector<8xf32>
    %49 = vector.shape_cast %48 : vector<8xf32> to vector<8x1xf32>
    %cst_24 = arith.constant 9.600000e+01 : f32
    %50 = vector.broadcast %cst_24 : f32 to vector<8x1xf32>
    %51 = arith.mulf %50, %44 : vector<8x1xf32>
    %52 = arith.mulf %51, %44 : vector<8x1xf32>
    %53 = arith.subf %49, %52 : vector<8x1xf32>
    %cst_25 = arith.constant 3.125000e-02 : f32
    %54 = vector.broadcast %cst_25 : f32 to vector<8x1xf32>
    %55 = arith.mulf %53, %54 : vector<8x1xf32>
    %cst_26 = arith.constant 9.99999974E-6 : f32
    %56 = vector.broadcast %cst_26 : f32 to vector<8x1xf32>
    %57 = arith.addf %55, %56 : vector<8x1xf32>
    %58 = math.rsqrt %57 : vector<8x1xf32>
    %59 = vector.broadcast %58 : vector<8x1xf32> to vector<8x128xf32>
    %60 = arith.mulf %46, %59 : vector<8x128xf32>
    %c0_27 = arith.constant 0 : index
    %c0_28 = arith.constant 0 : index
    %61 = vector.load %arg8[%c0_27, %c0_28] : memref<1x128xf32, #tpu.memory_space<vmem>>, vector<1x128xf32>
    %62 = vector.broadcast %61 : vector<1x128xf32> to vector<8x128xf32>
    %63 = arith.mulf %60, %62 : vector<8x128xf32>
    %c0_29 = arith.constant 0 : index
    %c0_30 = arith.constant 0 : index
    %64 = vector.load %arg9[%c0_29, %c0_30] : memref<1x128xf32, #tpu.memory_space<vmem>>, vector<1x128xf32>
    %65 = vector.broadcast %64 : vector<1x128xf32> to vector<8x128xf32>
    %66 = arith.addf %63, %65 : vector<8x128xf32>
    %cst_31 = arith.constant 0.000000e+00 : f32
    %67 = vector.broadcast %cst_31 : f32 to vector<8x128xf32>
    %68 = arith.maximumf %66, %67 : vector<8x128xf32>
    %69 = arith.truncf %68 : vector<8x128xf32> to vector<8x128xbf16>
    %c0_32 = arith.constant 0 : index
    %c0_33 = arith.constant 0 : index
    %70 = vector.load %arg10[%c0_32, %c0_33] : memref<128x128xbf16, #tpu.memory_space<vmem>>, vector<128x128xbf16>
    %cst_34 = arith.constant dense<0.000000e+00> : vector<8x128xf32>
    %71 = tpu.matmul %69, %70, %cst_34 {dimension_numbers = #tpu.dot_dimension_numbers<[1], [0], [0], [1], [0, 0, 1, 1], [], []>} : vector<8x128xbf16>, vector<128x128xbf16>, vector<8x128xf32> -> vector<8x128xf32>
    %c0_35 = arith.constant 0 : index
    %c0_36 = arith.constant 0 : index
    %72 = vector.load %arg11[%c0_35, %c0_36] : memref<1x128xf32, #tpu.memory_space<vmem>>, vector<1x128xf32>
    %73 = vector.broadcast %72 : vector<1x128xf32> to vector<8x128xf32>
    %74 = arith.addf %71, %73 : vector<8x128xf32>
    %cst_37 = arith.constant dense<0.000000e+00> : vector<8xf32>
    %75 = vector.multi_reduction <add>, %74, %cst_37 [1] : vector<8x128xf32> to vector<8xf32>
    %76 = vector.shape_cast %75 : vector<8xf32> to vector<8x1xf32>
    %cst_38 = arith.constant 6.250000e-02 : f32
    %77 = vector.broadcast %cst_38 : f32 to vector<8x1xf32>
    %78 = arith.mulf %76, %77 : vector<8x1xf32>
    %79 = vector.broadcast %78 : vector<8x1xf32> to vector<8x128xf32>
    %80 = arith.subf %74, %79 : vector<8x128xf32>
    %81 = arith.mulf %80, %80 : vector<8x128xf32>
    %cst_39 = arith.constant dense<0.000000e+00> : vector<8xf32>
    %82 = vector.multi_reduction <add>, %81, %cst_39 [1] : vector<8x128xf32> to vector<8xf32>
    %83 = vector.shape_cast %82 : vector<8xf32> to vector<8x1xf32>
    %cst_40 = arith.constant 1.120000e+02 : f32
    %84 = vector.broadcast %cst_40 : f32 to vector<8x1xf32>
    %85 = arith.mulf %84, %78 : vector<8x1xf32>
    %86 = arith.mulf %85, %78 : vector<8x1xf32>
    %87 = arith.subf %83, %86 : vector<8x1xf32>
    %cst_41 = arith.constant 6.250000e-02 : f32
    %88 = vector.broadcast %cst_41 : f32 to vector<8x1xf32>
    %89 = arith.mulf %87, %88 : vector<8x1xf32>
    %cst_42 = arith.constant 9.99999974E-6 : f32
    %90 = vector.broadcast %cst_42 : f32 to vector<8x1xf32>
    %91 = arith.addf %89, %90 : vector<8x1xf32>
    %92 = math.rsqrt %91 : vector<8x1xf32>
    %93 = vector.broadcast %92 : vector<8x1xf32> to vector<8x128xf32>
    %94 = arith.mulf %80, %93 : vector<8x128xf32>
    %c0_43 = arith.constant 0 : index
    %c0_44 = arith.constant 0 : index
    %95 = vector.load %arg12[%c0_43, %c0_44] : memref<1x128xf32, #tpu.memory_space<vmem>>, vector<1x128xf32>
    %96 = vector.broadcast %95 : vector<1x128xf32> to vector<8x128xf32>
    %97 = arith.mulf %94, %96 : vector<8x128xf32>
    %c0_45 = arith.constant 0 : index
    %c0_46 = arith.constant 0 : index
    %98 = vector.load %arg13[%c0_45, %c0_46] : memref<1x128xf32, #tpu.memory_space<vmem>>, vector<1x128xf32>
    %99 = vector.broadcast %98 : vector<1x128xf32> to vector<8x128xf32>
    %100 = arith.addf %97, %99 : vector<8x128xf32>
    %cst_47 = arith.constant 0.000000e+00 : f32
    %101 = vector.broadcast %cst_47 : f32 to vector<8x128xf32>
    %102 = arith.maximumf %100, %101 : vector<8x128xf32>
    %103 = arith.truncf %102 : vector<8x128xf32> to vector<8x128xbf16>
    %c0_48 = arith.constant 0 : index
    %c0_49 = arith.constant 0 : index
    %104 = vector.load %arg14[%c0_48, %c0_49] : memref<128x128xbf16, #tpu.memory_space<vmem>>, vector<128x128xbf16>
    %cst_50 = arith.constant dense<0.000000e+00> : vector<8x128xf32>
    %105 = tpu.matmul %103, %104, %cst_50 {dimension_numbers = #tpu.dot_dimension_numbers<[1], [0], [0], [1], [0, 0, 1, 1], [], []>} : vector<8x128xbf16>, vector<128x128xbf16>, vector<8x128xf32> -> vector<8x128xf32>
    %c0_51 = arith.constant 0 : index
    %c0_52 = arith.constant 0 : index
    %106 = vector.load %arg15[%c0_51, %c0_52] : memref<1x128xf32, #tpu.memory_space<vmem>>, vector<1x128xf32>
    %107 = vector.broadcast %106 : vector<1x128xf32> to vector<8x128xf32>
    %108 = arith.addf %105, %107 : vector<8x128xf32>
    %c0_53 = arith.constant 0 : index
    %c0_54 = arith.constant 0 : index
    %109 = vector.load %arg16[%c0_53, %c0_54] : memref<8x128xf32, #tpu.memory_space<vmem>>, vector<8x128xf32>
    tpu.vector_store %arg16[%c0_53, %c0_54], %108 {strides = array<i32>} : memref<8x128xf32, #tpu.memory_space<vmem>>, vector<8x128xf32>,
    return
  }
  func.func @transform_0(%arg0: i32) -> (i32, i32) {
    %c0_i32 = arith.constant 0 : i32
    %c0_i32_0 = arith.constant 0 : i32
    return %arg0, %c0_i32 : i32, i32
  }
  func.func @transform_1(%arg0: i32) -> (i32, i32) {
    %c0_i32 = arith.constant 0 : i32
    %c0_i32_0 = arith.constant 0 : i32
    %c0_i32_1 = arith.constant 0 : i32
    return %c0_i32, %c0_i32_0 : i32, i32
  }
  func.func @transform_2(%arg0: i32) -> (i32, i32) {
    %c0_i32 = arith.constant 0 : i32
    %c0_i32_0 = arith.constant 0 : i32
    %c0_i32_1 = arith.constant 0 : i32
    return %c0_i32, %c0_i32_0 : i32, i32
  }
  func.func @transform_3(%arg0: i32) -> (i32, i32) {
    %c0_i32 = arith.constant 0 : i32
    %c0_i32_0 = arith.constant 0 : i32
    %c0_i32_1 = arith.constant 0 : i32
    return %c0_i32, %c0_i32_0 : i32, i32
  }
  func.func @transform_4(%arg0: i32) -> (i32, i32) {
    %c0_i32 = arith.constant 0 : i32
    %c0_i32_0 = arith.constant 0 : i32
    %c0_i32_1 = arith.constant 0 : i32
    return %c0_i32, %c0_i32_0 : i32, i32
  }
  func.func @transform_5(%arg0: i32) -> (i32, i32) {
    %c0_i32 = arith.constant 0 : i32
    %c0_i32_0 = arith.constant 0 : i32
    %c0_i32_1 = arith.constant 0 : i32
    return %c0_i32, %c0_i32_0 : i32, i32
  }
  func.func @transform_6(%arg0: i32) -> (i32, i32) {
    %c0_i32 = arith.constant 0 : i32
    %c0_i32_0 = arith.constant 0 : i32
    %c0_i32_1 = arith.constant 0 : i32
    return %c0_i32, %c0_i32_0 : i32, i32
  }
  func.func @transform_7(%arg0: i32) -> (i32, i32) {
    %c0_i32 = arith.constant 0 : i32
    %c0_i32_0 = arith.constant 0 : i32
    %c0_i32_1 = arith.constant 0 : i32
    return %c0_i32, %c0_i32_0 : i32, i32
  }
  func.func @transform_8(%arg0: i32) -> (i32, i32) {
    %c0_i32 = arith.constant 0 : i32
    %c0_i32_0 = arith.constant 0 : i32
    %c0_i32_1 = arith.constant 0 : i32
    return %c0_i32, %c0_i32_0 : i32, i32
  }
  func.func @transform_9(%arg0: i32) -> (i32, i32) {
    %c0_i32 = arith.constant 0 : i32
    %c0_i32_0 = arith.constant 0 : i32
    %c0_i32_1 = arith.constant 0 : i32
    return %c0_i32, %c0_i32_0 : i32, i32
  }
  func.func @transform_10(%arg0: i32) -> (i32, i32) {
    %c0_i32 = arith.constant 0 : i32
    %c0_i32_0 = arith.constant 0 : i32
    %c0_i32_1 = arith.constant 0 : i32
    return %c0_i32, %c0_i32_0 : i32, i32
  }
  func.func @transform_11(%arg0: i32) -> (i32, i32) {
    %c0_i32 = arith.constant 0 : i32
    %c0_i32_0 = arith.constant 0 : i32
    %c0_i32_1 = arith.constant 0 : i32
    return %c0_i32, %c0_i32_0 : i32, i32
  }
  func.func @transform_12(%arg0: i32) -> (i32, i32) {
    %c0_i32 = arith.constant 0 : i32
    %c0_i32_0 = arith.constant 0 : i32
    %c0_i32_1 = arith.constant 0 : i32
    return %c0_i32, %c0_i32_0 : i32, i32
  }
  func.func @transform_13(%arg0: i32) -> (i32, i32) {
    %c0_i32 = arith.constant 0 : i32
    %c0_i32_0 = arith.constant 0 : i32
    %c0_i32_1 = arith.constant 0 : i32
    return %c0_i32, %c0_i32_0 : i32, i32
  }
  func.func @transform_14(%arg0: i32) -> (i32, i32) {
    %c0_i32 = arith.constant 0 : i32
    %c0_i32_0 = arith.constant 0 : i32
    %c0_i32_1 = arith.constant 0 : i32
    return %c0_i32, %c0_i32_0 : i32, i32
  }
  func.func @transform_15(%arg0: i32) -> (i32, i32) {
    %c0_i32 = arith.constant 0 : i32
    %c0_i32_0 = arith.constant 0 : i32
    return %arg0, %c0_i32 : i32, i32
  }
}

</mosaic_0001>

<bundles_post_ra>
// kernel: tpu_custom_call.1
= control target key start
LH: loop header
LB: loop body
LE: loop exit
PB: predicated region body
PF: predicated region fallthrough
CT: control target
= control target key end

     0   :  { %s1268_s0 = inlined_call_operand.hbm [shape: f32[8,128], index: 0, kind: input, shape index: {}]   ;;  %s1269_s1 = inlined_call_operand.hbm [shape: bf16[128,128], index: 1, kind: input, shape index: {}]   ;;  %s1270_s2 = inlined_call_operand.vmem [shape: f32[1,128], index: 2, kind: input, shape index: {}]   ;;  %s1271_s3 = inlined_call_operand.vmem [shape: f32[1,128], index: 3, kind: input, shape index: {}]   ;;  %s1272_s4 = inlined_call_operand.vmem [shape: f32[1,128], index: 4, kind: input, shape index: {}]   ;;  %s1273_s5 = inlined_call_operand.hbm [shape: bf16[128,128], index: 5, kind: input, shape index: {}]   ;;  %s1274_s6 = inlined_call_operand.vmem [shape: f32[1,128], index: 6, kind: input, shape index: {}]   ;;  %s1275_s7 = inlined_call_operand.vmem [shape: f32[1,128], index: 7, kind: input, shape index: {}]   ;;  %s1276_s8 = inlined_call_operand.vmem [shape: f32[1,128], index: 8, kind: input, shape index: {}]   ;;  %s1277_s9 = inlined_call_operand.hbm [shape: bf16[128,128], index: 9, kind: input, shape index: {}]   ;;  %s1278_s10 = inlined_call_operand.vmem [shape: f32[1,128], index: 10, kind: input, shape index: {}]   ;;  %s1279_s11 = inlined_call_operand.vmem [shape: f32[1,128], index: 11, kind: input, shape index: {}]   ;;  %s1280_s12 = inlined_call_operand.vmem [shape: f32[1,128], index: 12, kind: input, shape index: {}]   ;;  %s1281_s13 = inlined_call_operand.hbm [shape: bf16[128,128], index: 13, kind: input, shape index: {}]   ;;  %s1282_s14 = inlined_call_operand.vmem [shape: f32[1,128], index: 14, kind: input, shape index: {}]   ;;  %s1283_s15 = inlined_call_operand.hbm [shape: f32[8,128], index: 15, kind: output, shape index: {}]  }
   0x1   :  { %1285 = sst [smem:[#allocation16_spill]] %s1283_s15 }
   0x2   :  { %20 = vsyncpa [#allocation3], 0 }
   0x3   :  { %21 = vsyncpa [#allocation6], 0 }
   0x4   :  { %22 = vsyncpa [#allocation9], 0 }
   0x5   :  { %23 = vsyncpa [#allocation4], 0  ;;  %s1024_s18 = smov [#allocation5]   ;;  %s884_s22 = scalar_lea.hbm %s1269_s1, 1024 }
   0x6   :  { %s39_s19 = sshll.u32 %s1024_s18, 4  ;;  %p885_p0 = scmp.ne.s32.totalorder %s1269_s1, %s884_s22  ;;  %s40_s19 = int_to_ptr.vmem [resolvable:$true] %s39_s19 }
   0x7   :  { %p888_p1 = scmp.lt.u32.totalorder %s884_s22, %s1269_s1 }
   0x9   :  { %p890_p2 = pnand %p888_p1, %p885_p0 }
   0xb   :  { %893 = shalt.err (!%p890_p2)
}
   0xc   :  { %s894_s27 = scalar_lea.vmem %s40_s19, 1024  ;;  %p899_p4 = scmp.lt.s32.totalorder %s40_s19, %s40_s19 }
   0xd   :  { %p895_p3 = scmp.ne.s32.totalorder %s40_s19, %s894_s27  ;;  %p900_p5 = scmp.lt.s32.totalorder %s894_s27, %s894_s27 }
   0xf   :  { %p901_p6 = por %p900_p5, %p899_p4 }
  0x11   :  { %p902_p7 = pnand %p901_p6, %p895_p3 }
  0x13   :  { %905 = shalt.err (!%p902_p7)
}
  0x14   :  { %s1025_s28 = smov 64   ;;  %s1026_s29 = smov 4  }
  0x15   :  { %45 = dma.hbm_to_vmem [thread:$0]  %s1269_s1, 1024, %s40_s19, [#allocation6], %s1025_s28, %s1025_s28, %s1026_s29  }
  0x16   :  { %s1027_s17 = smov [#allocation8]   ;;  %s1028_s20 = smov [#allocation2]  }
  0x17   :  { %s75_s18 = sshll.u32 %s1027_s17, 4  ;;  %s30_s21 = sshll.u32 %s1028_s20, 4  ;;  %s76_s18 = int_to_ptr.vmem [resolvable:$true] %s75_s18  ;;  %s31_s21 = int_to_ptr.vmem [resolvable:$true] %s30_s21 }
  0x18   :  { %s906_s24 = scalar_lea.hbm %s1277_s9, 1024 }
  0x19   :  { %p907_p8 = scmp.ne.s32.totalorder %s1277_s9, %s906_s24  ;;  %p910_p9 = scmp.lt.u32.totalorder %s906_s24, %s1277_s9 }
  0x1b   :  { %p912_p10 = pnand %p910_p9, %p907_p8 }
  0x1d   :  { %915 = shalt.err (!%p912_p10)
}
  0x1e   :  { %s916_s1 = scalar_lea.vmem %s76_s18, 1024  ;;  %p921_p12 = scmp.lt.s32.totalorder %s76_s18, %s76_s18 }
  0x1f   :  { %p917_p11 = scmp.ne.s32.totalorder %s76_s18, %s916_s1  ;;  %p922_p13 = scmp.lt.s32.totalorder %s916_s1, %s916_s1 }
  0x21   :  { %p923_p0 = por %p922_p13, %p921_p12 }
  0x23   :  { %p924_p1 = pnand %p923_p0, %p917_p11 }
  0x25   :  { %927 = shalt.err (!%p924_p1)
}
  0x26   :  { %81 = dma.hbm_to_vmem [thread:$0]  %s1277_s9, 1024, %s76_s18, [#allocation9], %s1025_s28, %s1025_s28, %s1026_s29  }
  0x27   :  { %s928_s17 = scalar_lea.hbm %s1268_s0, 128 }
  0x28   :  { %p929_p2 = scmp.ne.s32.totalorder %s1268_s0, %s928_s17  ;;  %p932_p3 = scmp.lt.u32.totalorder %s928_s17, %s1268_s0 }
  0x2a   :  { %p934_p4 = pnand %p932_p3, %p929_p2 }
  0x2c   :  { %937 = shalt.err (!%p934_p4)
}
  0x2d   :  { %s938_s25 = scalar_lea.vmem %s31_s21, 128  ;;  %p943_p6 = scmp.lt.s32.totalorder %s31_s21, %s31_s21 }
  0x2e   :  { %p939_p5 = scmp.ne.s32.totalorder %s31_s21, %s938_s25  ;;  %p944_p7 = scmp.lt.s32.totalorder %s938_s25, %s938_s25 }
  0x30   :  { %p945_p8 = por %p944_p7, %p943_p6 }
  0x32   :  { %p946_p9 = pnand %p945_p8, %p939_p5 }
  0x34   :  { %949 = shalt.err (!%p946_p9)
}
  0x35   :  { %33 = dma.hbm_to_vmem [thread:$0]  %s1268_s0, 128, %s31_s21, [#allocation3]  }
  0x36   :  { %s1029_s26 = smov [#allocation7]   ;;  %s1030_s1 = smov [#allocation10]  }
  0x37   :  { %s57_s27 = sshll.u32 %s1029_s26, 4  ;;  %s93_s19 = sshll.u32 %s1030_s1, 4  ;;  %s58_s27 = int_to_ptr.vmem [resolvable:$true] %s57_s27  ;;  %s94_s19 = int_to_ptr.vmem [resolvable:$true] %s93_s19 }
  0x38   :  { %s950_s15 = scalar_lea.hbm %s1273_s5, 1024 }
  0x39   :  { %p951_p10 = scmp.ne.s32.totalorder %s1273_s5, %s950_s15  ;;  %p954_p11 = scmp.lt.u32.totalorder %s950_s15, %s1273_s5 }
  0x3b   :  { %p956_p12 = pnand %p954_p11, %p951_p10 }
  0x3d   :  { %959 = shalt.err (!%p956_p12)
}
  0x3e   :  { %s960_s0 = scalar_lea.vmem %s58_s27, 1024  ;;  %p965_p0 = scmp.lt.s32.totalorder %s58_s27, %s58_s27 }
  0x3f   :  { %p961_p13 = scmp.ne.s32.totalorder %s58_s27, %s960_s0  ;;  %p966_p1 = scmp.lt.s32.totalorder %s960_s0, %s960_s0 }
  0x41   :  { %p967_p2 = por %p966_p1, %p965_p0 }
  0x43   :  { %p968_p3 = pnand %p967_p2, %p961_p13 }
  0x45   :  { %971 = shalt.err (!%p968_p3)
}
  0x46   :  { %63 = dma.hbm_to_vmem [thread:$0]  %s1273_s5, 1024, %s58_s27, [#allocation6], %s1025_s28, %s1025_s28, %s1026_s29  }
  0x47   :  { %s972_s18 = scalar_lea.hbm %s1281_s13, 1024 }
  0x48   :  { %p973_p4 = scmp.ne.s32.totalorder %s1281_s13, %s972_s18  ;;  %p976_p5 = scmp.lt.u32.totalorder %s972_s18, %s1281_s13 }
  0x4a   :  { %p978_p6 = pnand %p976_p5, %p973_p4 }
  0x4c   :  { %981 = shalt.err (!%p978_p6)
}
  0x4d   :  { %s982_s15 = scalar_lea.vmem %s94_s19, 1024  ;;  %p987_p8 = scmp.lt.s32.totalorder %s94_s19, %s94_s19 }
  0x4e   :  { %p983_p7 = scmp.ne.s32.totalorder %s94_s19, %s982_s15  ;;  %p988_p9 = scmp.lt.s32.totalorder %s982_s15, %s982_s15 }
  0x50   :  { %p989_p10 = por %p988_p9, %p987_p8 }
  0x52   :  { %p990_p11 = pnand %p989_p10, %p983_p7 }
  0x54   :  { %993 = shalt.err (!%p990_p11)
}
  0x55   :  { %99 = dma.hbm_to_vmem [thread:$0]  %s1281_s13, 1024, %s94_s19, [#allocation9], %s1025_s28, %s1025_s28, %s1026_s29  }
  0x56   :  { %1016 = dma.done.wait [#allocation3], 128  }
  0x57   :  { %1017 = vsyncadd [#allocation3], 4294967168 }
  0x58   :  { %1018 = dma.done.wait [#allocation6], 2048  }
  0x59   :  { %1019 = vsyncadd [#allocation6], 4294965248 }
  0x5a   :  { %1020 = dma.done.wait [#allocation9], 2048  }
  0x5b   :  { %1021 = vsyncadd [#allocation9], 4294965248  ;;  %v1031_v0 = vmov 0.0   ;;  %vm1032_vm0 = vmmov 0   ;;  %v846_v1 = vld [vmem:[#allocation5] sm:$0xff]   ;;  %v847_v2 = vld [vmem:[#allocation5 + $0x8] sm:$0xff]  }
  0x5c   :  { %756 = vmatprep.subr.bf16.mxu0 %v1031_v0  ;;  %772 = vmatprep.mubr.msk.bf16.mxu0 %vm1032_vm0, %v1031_v0  ;;  %v848_v3 = vld [vmem:[#allocation5 + $0x10] sm:$0xff]   ;;  %v849_v4 = vld [vmem:[#allocation5 + $0x18] sm:$0xff]   ;;  %v850_v5 = vld [vmem:[#allocation5 + $0x20] sm:$0xff]   ;;  %s1033_s18 = smov [#allocation11]  }
  0x5d   :  { %776 = vmatprep.subr.bf16.mxu1 %v1031_v0  ;;  %792 = vmatprep.mubr.msk.bf16.mxu1 %vm1032_vm0, %v1031_v0  ;;  %v851_v6 = vld [vmem:[#allocation5 + $0x28] sm:$0xff]   ;;  %v852_v7 = vld [vmem:[#allocation5 + $0x30] sm:$0xff]   ;;  %v853_v8 = vld [vmem:[#allocation5 + $0x38] sm:$0xff]   ;;  %s667_s26 = sshll.u32 %s1033_s18, 4  ;;  %s668_s26 = int_to_ptr.vmem [resolvable:$true] %s667_s26 }
  0x5e   :  { %757 = vmatpush3.bf16.msra.mxu0 %v846_v1  ;;  %v118_v9 = vld [vmem:[#allocation2] sm:$0xff]  ;;  %v854_v17 = vld [vmem:[#allocation7] sm:$0xff]   ;;  %v855_v22 = vld [vmem:[#allocation7 + $0x8] sm:$0xff]   ;;  %p999_p13 = scmp.lt.s32.totalorder %s668_s26, %s668_s26 }
  0x5f   :  { %758 = vmatprep.subr.bf16.mxu0 %v1031_v0  ;;  %v119_v10 = vpack.c.bf16 %v118_v9, %v118_v9  ;;  %v678_v11 = vld [vmem:[%s1270_s2] ss:$0 sm:$0xff]  ;;  %777 = vmatpush3.bf16.msra.mxu1 %v854_v17  ;;  %v856_v23 = vld [vmem:[#allocation7 + $0x10] sm:$0xff]   ;;  %v858_v25 = vld [vmem:[#allocation7 + $0x20] sm:$0xff]  }
  0x60   :  { %778 = vmatprep.subr.bf16.mxu1 %v1031_v0  ;;  %v857_v24 = vld [vmem:[#allocation7 + $0x18] sm:$0xff]   ;;  %v859_v26 = vld [vmem:[#allocation7 + $0x28] sm:$0xff]   ;;  %v860_v27 = vld [vmem:[#allocation7 + $0x30] sm:$0xff]  }
  0x61   :  { %v861_v28 = vld [vmem:[#allocation7 + $0x38] sm:$0xff]   ;;  %v862_v49 = vld [vmem:[#allocation8] sm:$0xff]   ;;  %v863_v54 = vld [vmem:[#allocation8 + $0x8] sm:$0xff]  }
  0x62   :  { %759 = vmatpush3.bf16.msra.mxu0 %v847_v2  ;;  %v687_v36 = vld [vmem:[%s1271_s3] ss:$0 sm:$0xff]  ;;  %v864_v55 = vld [vmem:[#allocation8 + $0x10] sm:$0xff]   ;;  %v866_v57 = vld [vmem:[#allocation8 + $0x20] sm:$0xff]  }
  0x63   :  { %760 = vmatprep.subr.bf16.mxu0 %v1031_v0  ;;  %779 = vmatpush3.bf16.msra.mxu1 %v855_v22  ;;  %v688_v38 = vld [vmem:[%s1272_s4] ss:$0 sm:$0xff]  ;;  %v867_v58 = vld [vmem:[#allocation8 + $0x28] sm:$0xff]   ;;  %v868_v59 = vld [vmem:[#allocation8 + $0x30] sm:$0xff]  }
  0x64   :  { %780 = vmatprep.subr.bf16.mxu1 %v1031_v0  ;;  %v689_v43 = vld [vmem:[%s1274_s6] ss:$0 sm:$0xff] }
  0x65   :  { %v865_v56 = vld [vmem:[#allocation8 + $0x18] sm:$0xff]  }
  0x66   :  { %761 = vmatpush3.bf16.msra.mxu0 %v848_v3  ;;  %v869_v60 = vld [vmem:[#allocation8 + $0x38] sm:$0xff]  }
  0x67   :  { %762 = vmatprep.subr.bf16.mxu0 %v1031_v0  ;;  %781 = vmatpush3.bf16.msra.mxu1 %v856_v23  ;;  %v871_v23 = vld [vmem:[#allocation10 + $0x8] sm:$0xff]  }
  0x68   :  { %782 = vmatprep.subr.bf16.mxu1 %v1031_v0 }
  0x6a   :  { %763 = vmatpush3.bf16.msra.mxu0 %v849_v4 }
  0x6b   :  { %764 = vmatprep.subr.bf16.mxu0 %v1031_v0  ;;  %783 = vmatpush3.bf16.msra.mxu1 %v857_v24  ;;  %v872_v24 = vld [vmem:[#allocation10 + $0x10] sm:$0xff]  }
  0x6c   :  { %784 = vmatprep.subr.bf16.mxu1 %v1031_v0 }
  0x6e   :  { %765 = vmatpush3.bf16.msra.mxu0 %v850_v5  ;;  %v698_v5 = vld [vmem:[%s1275_s7] ss:$0 sm:$0xff] }
  0x6f   :  { %766 = vmatprep.subr.bf16.mxu0 %v1031_v0  ;;  %785 = vmatpush3.bf16.msra.mxu1 %v858_v25  ;;  %v873_v25 = vld [vmem:[#allocation10 + $0x18] sm:$0xff]  }
  0x70   :  { %786 = vmatprep.subr.bf16.mxu1 %v1031_v0 }
  0x72   :  { %767 = vmatpush3.bf16.msra.mxu0 %v851_v6 }
  0x73   :  { %768 = vmatprep.subr.bf16.mxu0 %v1031_v0  ;;  %787 = vmatpush3.bf16.msra.mxu1 %v859_v26  ;;  %v874_v26 = vld [vmem:[#allocation10 + $0x20] sm:$0xff]  }
  0x74   :  { %788 = vmatprep.subr.bf16.mxu1 %v1031_v0 }
  0x76   :  { %769 = vmatpush3.bf16.msra.mxu0 %v852_v7  ;;  %v699_v7 = vld [vmem:[%s1276_s8] ss:$0 sm:$0xff] }
  0x77   :  { %770 = vmatprep.subr.bf16.mxu0 %v1031_v0  ;;  %789 = vmatpush3.bf16.msra.mxu1 %v860_v27  ;;  %v875_v27 = vld [vmem:[#allocation10 + $0x28] sm:$0xff]  }
  0x78   :  { %790 = vmatprep.subr.bf16.mxu1 %v1031_v0 }
  0x7a   :  { %771 = vmatpush3.bf16.msra.mxu0 %v853_v8 }
  0x7b   :  { %796 = vmatprep.subr.bf16.mxu0 %v1031_v0  ;;  %791 = vmatpush3.bf16.msra.mxu1 %v861_v28  ;;  %v876_v28 = vld [vmem:[#allocation10 + $0x30] sm:$0xff]  }
  0x7c   :  { %816 = vmatprep.subr.bf16.mxu1 %v1031_v0 }
  0x7d   :  { %773 = vmatmul.mubr.bf16.vlgmr.msra.gmra.mrb[0].mxu0 %v119_v10 }
  0x7e   :  { %812 = vmatprep.mubr.msk.bf16.mxu0 %vm1032_vm0, %v1031_v0  ;;  %797 = vmatpush3.bf16.msra.mxu0 %v862_v49 }
  0x7f   :  { %798 = vmatprep.subr.bf16.mxu0 %v1031_v0 }
  0x82   :  { %799 = vmatpush3.bf16.msra.mxu0 %v863_v54 }
  0x83   :  { %800 = vmatprep.subr.bf16.mxu0 %v1031_v0 }
  0x86   :  { %801 = vmatpush3.bf16.msra.mxu0 %v864_v55 }
  0x87   :  { %802 = vmatprep.subr.bf16.mxu0 %v1031_v0 }
  0x8a   :  { %803 = vmatpush3.bf16.msra.mxu0 %v865_v56 }
  0x8b   :  { %804 = vmatprep.subr.bf16.mxu0 %v1031_v0 }
  0x8e   :  { %805 = vmatpush3.bf16.msra.mxu0 %v866_v57 }
  0x8f   :  { %806 = vmatprep.subr.bf16.mxu0 %v1031_v0 }
  0x92   :  { %807 = vmatpush3.bf16.msra.mxu0 %v867_v58 }
  0x93   :  { %808 = vmatprep.subr.bf16.mxu0 %v1031_v0 }
  0x96   :  { %809 = vmatpush3.bf16.msra.mxu0 %v868_v59 }
  0x97   :  { %810 = vmatprep.subr.bf16.mxu0 %v1031_v0 }
  0x9a   :  { %811 = vmatpush3.bf16.msra.mxu0 %v869_v60 }
 0x150   :  { %v225_v12 = vpop.f32.mrb[0].mxu0 }
 0x151   :  { %v226_v13 = vadd.f32 %v678_v11, %v225_v12  ;;  %v774_v14 = vpop.f32.mrb[1].mxu0  ;;  %v700_v12 = vld [vmem:[%s1278_s10] ss:$0 sm:$0xff] }
 0x152   :  { %v228_v15 = vpop.f32.mrb[2].mxu0 }
 0x153   :  { %231 = vadd.xlane.f32.xlu0 %v226_v13  ;;  %v775_v16 = vpop.f32.mrb[3].mxu0 }
 0x1e0   :  { %v232_v18 = vpop.xlane.xlu0 %231 }
 0x1e1   :  { %v233_v19 = vmul.f32 0.015625, %v232_v18  ;;  %v870_v18 = vld [vmem:[#allocation10] sm:$0xff]  }
 0x1e3   :  { %v234_v20 = vsub.f32 %v226_v13, %v233_v19  ;;  %v238_v29 = vmul.f32 64.0, %v233_v19 }
 0x1e5   :  { %v235_v21 = vmul.f32 %v234_v20, %v234_v20  ;;  %v239_v30 = vmul.f32 %v238_v29, %v233_v19  ;;  %v877_v29 = vld [vmem:[#allocation10 + $0x38] sm:$0xff]  }
 0x1e7   :  { %236 = vadd.xlane.f32.xlu0 %v235_v21 }
 0x274   :  { %v237_v31 = vpop.xlane.xlu0 %236 }
 0x275   :  { %v240_v32 = vsub.f32 %v237_v31, %v239_v30 }
 0x277   :  { %v241_v33 = vmul.f32 0.015625, %v240_v32 }
 0x279   :  { %v242_v34 = vadd.f32 1e-05, %v241_v33 }
 0x27b   :  { %878 = vrsqrt.f32 %v242_v34 }
 0x285   :  { %v879_v35 = vpop.eup %878 }
 0x286   :  { %v244_v37 = vmul.f32 %v879_v35, %v234_v20 }
 0x288   :  { %v252_v39 = vmul.f32 %v687_v36, %v244_v37  ;;  %v709_v37 = vld [vmem:[%s1279_s11] ss:$0 sm:$0xff]  ;;  %s994_s11 = scalar_lea.vmem %s668_s26, 128 }
 0x289   :  { %p995_p12 = scmp.ne.s32.totalorder %s668_s26, %s994_s11  ;;  %p1000_p0 = scmp.lt.s32.totalorder %s994_s11, %s994_s11 }
 0x28a   :  { %v260_v40 = vadd.f32 %v688_v38, %v252_v39  ;;  %v710_v39 = vld [vmem:[%s1280_s12] ss:$0 sm:$0xff] }
 0x28b   :  { %p1001_p1 = por %p1000_p0, %p999_p13 }
 0x28c   :  { %v261_v41 = vmax.f32 %v260_v40, 0.0 }
 0x28d   :  { %p1002_p2 = pnand %p1001_p1, %p995_p12 }
 0x28e   :  { %v262_v42 = vpack.c.bf16 %v261_v41, %v261_v41 }
 0x290   :  { %793 = vmatmul.mubr.bf16.vlgmr.msra.gmra.mrb[0].mxu1 %v262_v42 }
 0x291   :  { %832 = vmatprep.mubr.msk.bf16.mxu1 %vm1032_vm0, %v1031_v0  ;;  %817 = vmatpush3.bf16.msra.mxu1 %v870_v18 }
 0x292   :  { %818 = vmatprep.subr.bf16.mxu1 %v1031_v0 }
 0x295   :  { %819 = vmatpush3.bf16.msra.mxu1 %v871_v23 }
 0x296   :  { %820 = vmatprep.subr.bf16.mxu1 %v1031_v0 }
 0x299   :  { %821 = vmatpush3.bf16.msra.mxu1 %v872_v24 }
 0x29a   :  { %822 = vmatprep.subr.bf16.mxu1 %v1031_v0 }
 0x29d   :  { %823 = vmatpush3.bf16.msra.mxu1 %v873_v25 }
 0x29e   :  { %824 = vmatprep.subr.bf16.mxu1 %v1031_v0 }
 0x2a1   :  { %825 = vmatpush3.bf16.msra.mxu1 %v874_v26 }
 0x2a2   :  { %826 = vmatprep.subr.bf16.mxu1 %v1031_v0 }
 0x2a5   :  { %827 = vmatpush3.bf16.msra.mxu1 %v875_v27 }
 0x2a6   :  { %828 = vmatprep.subr.bf16.mxu1 %v1031_v0 }
 0x2a9   :  { %829 = vmatpush3.bf16.msra.mxu1 %v876_v28 }
 0x2aa   :  { %830 = vmatprep.subr.bf16.mxu1 %v1031_v0 }
 0x2ad   :  { %831 = vmatpush3.bf16.msra.mxu1 %v877_v29 }
 0x363   :  { %v368_v44 = vpop.f32.mrb[0].mxu1 }
 0x364   :  { %v369_v45 = vadd.f32 %v689_v43, %v368_v44  ;;  %v794_v46 = vpop.f32.mrb[1].mxu1  ;;  %v711_v43 = vld [vmem:[%s1282_s14] ss:$0 sm:$0xff] }
 0x365   :  { %v371_v47 = vpop.f32.mrb[2].mxu1 }
 0x366   :  { %374 = vadd.xlane.f32.xlu1 %v369_v45  ;;  %v795_v48 = vpop.f32.mrb[3].mxu1 }
 0x3f3   :  { %v375_v50 = vpop.xlane.xlu1 %374 }
 0x3f4   :  { %v376_v51 = vmul.f32 0.03125, %v375_v50 }
 0x3f6   :  { %v377_v52 = vsub.f32 %v369_v45, %v376_v51  ;;  %v381_v61 = vmul.f32 96.0, %v376_v51 }
 0x3f8   :  { %v378_v53 = vmul.f32 %v377_v52, %v377_v52  ;;  %v382_v62 = vmul.f32 %v381_v61, %v376_v51 }
 0x3fa   :  { %379 = vadd.xlane.f32.xlu1 %v378_v53 }
 0x487   :  { %v380_v63 = vpop.xlane.xlu1 %379 }
 0x488   :  { %v383_v1 = vsub.f32 %v380_v63, %v382_v62 }
 0x48a   :  { %v384_v2 = vmul.f32 0.03125, %v383_v1 }
 0x48c   :  { %v385_v3 = vadd.f32 1e-05, %v384_v2 }
 0x48e   :  { %880 = vrsqrt.f32 %v385_v3 }
 0x498   :  { %v881_v4 = vpop.eup %880 }
 0x499   :  { %v387_v6 = vmul.f32 %v881_v4, %v377_v52 }
 0x49b   :  { %v395_v8 = vmul.f32 %v698_v5, %v387_v6 }
 0x49d   :  { %v403_v9 = vadd.f32 %v699_v7, %v395_v8 }
 0x49f   :  { %v404_v10 = vmax.f32 %v403_v9, 0.0 }
 0x4a1   :  { %v405_v11 = vpack.c.bf16 %v404_v10, %v404_v10 }
 0x4a3   :  { %813 = vmatmul.mubr.bf16.vlgmr.msra.gmra.mrb[4].mxu0 %v405_v11 }
 0x576   :  { %v511_v13 = vpop.f32.mrb[4].mxu0 }
 0x577   :  { %v512_v14 = vadd.f32 %v700_v12, %v511_v13  ;;  %v814_v15 = vpop.f32.mrb[5].mxu0 }
 0x578   :  { %v514_v16 = vpop.f32.mrb[6].mxu0 }
 0x579   :  { %517 = vadd.xlane.f32.xlu0 %v512_v14  ;;  %v815_v17 = vpop.f32.mrb[7].mxu0 }
 0x606   :  { %v518_v19 = vpop.xlane.xlu0 %517 }
 0x607   :  { %v519_v20 = vmul.f32 0.0625, %v518_v19 }
 0x609   :  { %v520_v21 = vsub.f32 %v512_v14, %v519_v20  ;;  %v524_v30 = vmul.f32 112.0, %v519_v20 }
 0x60b   :  { %v521_v22 = vmul.f32 %v520_v21, %v520_v21  ;;  %v525_v31 = vmul.f32 %v524_v30, %v519_v20 }
 0x60d   :  { %522 = vadd.xlane.f32.xlu1 %v521_v22 }
 0x69a   :  { %v523_v32 = vpop.xlane.xlu1 %522 }
 0x69b   :  { %v526_v33 = vsub.f32 %v523_v32, %v525_v31 }
 0x69d   :  { %v527_v34 = vmul.f32 0.0625, %v526_v33 }
 0x69f   :  { %v528_v35 = vadd.f32 1e-05, %v527_v34 }
 0x6a1   :  { %882 = vrsqrt.f32 %v528_v35 }
 0x6ab   :  { %v883_v36 = vpop.eup %882 }
 0x6ac   :  { %v530_v38 = vmul.f32 %v883_v36, %v520_v21 }
 0x6ae   :  { %v538_v40 = vmul.f32 %v709_v37, %v530_v38 }
 0x6b0   :  { %v546_v0 = vadd.f32 %v710_v39, %v538_v40 }
 0x6b2   :  { %v547_v41 = vmax.f32 %v546_v0, 0.0 }
 0x6b4   :  { %v548_v42 = vpack.c.bf16 %v547_v41, %v547_v41 }
 0x6b6   :  { %833 = vmatmul.mubr.bf16.vlgmr.msra.gmra.mrb[4].mxu1 %v548_v42 }
 0x789   :  { %v654_v44 = vpop.f32.mrb[4].mxu1 }
 0x78a   :  { %v655_v45 = vadd.f32 %v711_v43, %v654_v44  ;;  %v834_v46 = vpop.f32.mrb[5].mxu1 }
 0x78b   :  { %v657_v47 = vpop.f32.mrb[6].mxu1 }
 0x78c   :  { %660 = vst [vmem:[#allocation11] sm:$0xff] %v655_v45  ;;  %v835_v48 = vpop.f32.mrb[7].mxu1 }
 0x78d   :  { %1005 = shalt.err (!%p1002_p2)
}
 0x78e   :  { %s1286_s30 = sld [smem:[#allocation16_spill]] }
 0x794   :  { %s1006_s14 = scalar_lea.hbm %s1286_s30, 128 }
 0x795   :  { %p1007_p3 = scmp.ne.s32.totalorder %s1286_s30, %s1006_s14  ;;  %p1010_p4 = scmp.lt.u32.totalorder %s1006_s14, %s1286_s30 }
 0x797   :  { %p1012_p5 = pnand %p1010_p4, %p1007_p3 }
 0x799   :  { %1015 = shalt.err (!%p1012_p5)
}
 0x79a   :  { %670 = dma.vmem_to_hbm [thread:$0]  %s668_s26, 128, %s1286_s30, [#allocation4]  }
 0x79b   :  { %1022 = dma.done.wait [#allocation4], 128  }
 0x79c   :  { %1023 = vsyncadd [#allocation4], 4294967168 }
 0x79d   :  { %674 = vsyncpa [#allocation3], 1 }
 0x79e   :  { %675 = vsyncpa [#allocation6], 1 }
 0x79f   :  { %676 = vsyncpa [#allocation9], 1 }
 0x7a0   :  { %677 = vsyncpa [#allocation4], 1 }

</bundles_post_ra>
